<compile_context>
chip_gen: v5e
topology: v5e:2x2
jax: 0.10.0
libtpu: 0.0.40
codegen_flags: <defaults>
</compile_context>

<pallas_src>
import functools
import numpy as np
import jax
import jax.numpy as jnp
from jax.experimental import pallas as pl
from jax.experimental.pallas import tpu as pltpu

BN_EPS = 1e-5


def _round_up(x, m):
    return (x + m - 1) // m * m


def _sum_agg_kernel(x_ref, w1_ref, w2_ref, o_ref, *, k_groups, h2):
    """Grid = (N // tn,) -- single 'parallel' token axis.

    x_ref : (C_pad, TN)     bf16 packed channels (all groups) + per-group 0/1 mask channel
    w1_ref: (K*H1p, C_pad)  bf16 block-diagonal layer-1 weights (bias & mask folded in)
    w2_ref: (K*H2, K*H1p)   bf16 block-diagonal layer-2 weights (bias folded into the
                            passthrough-mask column)
    o_ref : (H2, TN)        f32 lane-dense output tile = sum over groups
    """
    h = jnp.dot(w1_ref[...], x_ref[...], preferred_element_type=jnp.float32)
    h = jnp.maximum(h, 0.0).astype(jnp.bfloat16)            # (K*H1p, TN)
    y = jnp.dot(w2_ref[...], h, preferred_element_type=jnp.float32)
    y = jnp.maximum(y, 0.0)                                  # (K*H2, TN); masked tokens are exactly 0
    acc = y[0:h2]
    for g in range(1, k_groups):                             # K tiny & static -> unrolled adds
        acc = acc + y[g * h2:(g + 1) * h2]
    o_ref[...] = acc.astype(o_ref.dtype)


def _pick_tn(n, min_steps=2):
    """Largest lane-dense tile that still leaves >= min_steps grid steps (v7x megacore)."""
    candidates = (8192, 4096, 2048, 1024, 512, 256, 128)
    for t in candidates:
        if n % t == 0 and n // t >= min_steps:
            return t
    for t in candidates:
        if n % t == 0:
            return t
    return n


def sum_aggregation_pallas(x, w1, w2, *, k_groups, h2, tn=None):
    """x: (C_pad, N) bf16; w1: (K*H1p, C_pad) bf16; w2: (K*H2, K*H1p) bf16.
    Returns (H2, N) f32 = sum over groups of the masked, scattered MLP outputs."""
    C, N = x.shape
    KH1 = w1.shape[0]
    KH2 = w2.shape[0]
    assert KH2 == k_groups * h2
    if tn is None:
        tn = _pick_tn(N)
    assert N % tn == 0

    return pl.pallas_call(
        functools.partial(_sum_agg_kernel, k_groups=k_groups, h2=h2),
        out_shape=jax.ShapeDtypeStruct((h2, N), jnp.float32),
        grid_spec=pltpu.PrefetchScalarGridSpec(
            num_scalar_prefetch=0,
            grid=(N // tn,),
            in_specs=[
                pl.BlockSpec((C, tn), lambda n: (0, n)),
                # full-array, constant-index blocks -> DMA'd once, VMEM-resident
                pl.BlockSpec((KH1, C), lambda n: (0, 0)),
                pl.BlockSpec((KH2, KH1), lambda n: (0, 0)),
            ],
            out_specs=pl.BlockSpec((h2, tn), lambda n: (0, n)),
        ),
        compiler_params=pltpu.CompilerParams(
            dimension_semantics=("parallel",)),
    )(x, w1, w2)


def fold_bn(W, gamma, beta, mean, var, eps=BN_EPS):
    """Fold eval-mode BatchNorm1d into a bias-free 1x1 conv weight.  W: (C_out, C_in)."""
    scale = gamma / np.sqrt(var + eps)
    return (scale[:, None] * W).astype(np.float32), (beta - scale * mean).astype(np.float32)


def pack_inputs_and_weights(feats_list, mask_list, params, input_channels, H1, H2, N):
    """Host-side glue: scatter active feats into one dense (C_pad, N) slab (with a 0/1
    mask channel per group) and build block-diagonal, BN/bias/mask-folded weights."""
    K = len(input_channels)
    c_per = [c + 1 for c in input_channels]            # +1 mask channel per group
    coff = np.concatenate([[0], np.cumsum(c_per)]).astype(int)
    C_pad = _round_up(int(coff[-1]), 8)
    H1p = _round_up(H1 + 1, 8)                         # +1 passthrough (mask) hidden row

    x = np.zeros((C_pad, N), np.float32)
    W1 = np.zeros((K * H1p, C_pad), np.float32)
    W2 = np.zeros((K * H2, K * H1p), np.float32)

    for g in range(K):
        feats, mask = feats_list[g], mask_list[g]
        if feats is None or feats.shape[-1] <= 1:      # module's skip condition -> exact 0 contribution
            continue
        cin = input_channels[g]
        c0 = int(coff[g])
        mch = c0 + cin                                 # this group's mask channel
        idx = np.flatnonzero(mask.reshape(-1))         # row-major True order (as torch bool indexing)
        x[c0:c0 + cin, idx] = feats
        x[mch, idx] = 1.0

        W1g, g1, be1, m1, v1, W2g, g2, be2, m2, v2 = params[g]
        W1f, b1f = fold_bn(W1g, g1, be1, m1, v1)
        W2f, b2f = fold_bn(W2g, g2, be2, m2, v2)
        r0 = g * H1p
        W1[r0:r0 + H1, c0:c0 + cin] = W1f
        W1[r0:r0 + H1, mch] = b1f                      # layer-1 bias rides the 0/1 mask channel
        W1[r0 + H1, mch] = 1.0                         # passthrough row: carries mask to layer 2
        s0 = g * H2
        W2[s0:s0 + H2, r0:r0 + H1] = W2f
        W2[s0:s0 + H2, r0 + H1] = b2f                  # layer-2 bias rides the passthrough row
    return x, W1, W2


if __name__ == "__main__":
    # --- configuration (mimics aggregation_cfg.mlps and input_channels) ---
    B, M = 2, 128                 # prob/mask shape (B, M)
    input_channels = [6, 10]      # per-group C_in of feats_list
    mlps = [16, 32]               # cfg.mlps -> output_channels = 32
    K = len(input_channels)
    H1, H2 = mlps
    C_out = mlps[-1]
    N = B * M

    key = jax.random.PRNGKey(0)
    rng = np.random.default_rng(0)

    # --- build synthetic masks / active features per group (host side) ---
    feats_list, mask_list = [], []
    for g in range(K):
        mask = rng.random((B, M)) < 0.5
        active = int(mask.sum())
        key, sub = jax.random.split(key)
        feats = np.asarray(
            jax.random.normal(sub, (input_channels[g], active), jnp.float32))
        feats_list.append(feats)
        mask_list.append(mask)

    # --- deterministic parameter init (Conv1d k=1 no-bias + BatchNorm1d) ---
    params = []
    for g in range(K):
        cin = input_channels[g]
        key, k1, k2, k3, k4, k5, k6 = jax.random.split(key, 7)
        W1 = np.asarray(jax.random.normal(k1, (H1, cin), jnp.float32)) * 0.1
        W2 = np.asarray(jax.random.normal(k2, (H2, H1), jnp.float32)) * 0.1
        g1 = 1.0 + 0.1 * np.asarray(jax.random.normal(k3, (H1,), jnp.float32))
        b1 = 0.1 * np.asarray(jax.random.normal(k4, (H1,), jnp.float32))
        m1 = 0.1 * np.asarray(jax.random.normal(k5, (H1,), jnp.float32))
        v1 = 1.0 + 0.1 * np.abs(np.asarray(jax.random.normal(k6, (H1,), jnp.float32)))
        key, k3, k4, k5, k6 = jax.random.split(key, 5)
        g2 = 1.0 + 0.1 * np.asarray(jax.random.normal(k3, (H2,), jnp.float32))
        b2 = 0.1 * np.asarray(jax.random.normal(k4, (H2,), jnp.float32))
        m2 = 0.1 * np.asarray(jax.random.normal(k5, (H2,), jnp.float32))
        v2 = 1.0 + 0.1 * np.abs(np.asarray(jax.random.normal(k6, (H2,), jnp.float32)))
        params.append((W1, g1, b1, m1, v1, W2, g2, b2, m2, v2))

    # --- pack inputs + block-diagonal folded weights, cast to bf16 for the kernel ---
    x_np, w1_np, w2_np = pack_inputs_and_weights(
        feats_list, mask_list, params, input_channels, H1, H2, N)
    x_bf = jnp.asarray(x_np, jnp.bfloat16)
    w1_bf = jnp.asarray(w1_np, jnp.bfloat16)
    w2_bf = jnp.asarray(w2_np, jnp.bfloat16)

    # --- run the Pallas kernel ---
    out = sum_aggregation_pallas(x_bf, w1_bf, w2_bf, k_groups=K, h2=H2)
    out = jax.block_until_ready(out)                                     # (C_out, N) f32
    new_feats = np.asarray(out).reshape(C_out, B, M).transpose(1, 0, 2)  # (B, C_out, M)

    # --- plain-numpy f32 reference mirroring the PyTorch forward (eval mode) ---
    ref = np.zeros((K, C_out, N), np.float32)
    for g in range(K):
        feats, mask = feats_list[g], mask_list[g]
        if feats is None or feats.shape[-1] <= 1:
            continue
        W1, g1, be1, m1, v1, W2, g2, be2, m2, v2 = params[g]
        y = W1 @ feats
        y = g1[:, None] * (y - m1[:, None]) / np.sqrt(v1[:, None] + BN_EPS) + be1[:, None]
        y = np.maximum(y, 0.0)
        y = W2 @ y
        y = g2[:, None] * (y - m2[:, None]) / np.sqrt(v2[:, None] + BN_EPS) + be2[:, None]
        y = np.maximum(y, 0.0)
        ref[g][:, np.flatnonzero(mask.reshape(-1))] = y
    ref = ref.sum(0).reshape(C_out, B, M).transpose(1, 0, 2)   # (B, C_out, M)

    # bf16 inputs with f32 accumulation: error is bounded by input quantization.
    np.testing.assert_allclose(new_feats, ref, rtol=1e-2, atol=1e-2)
    print("KERNEL_OK")
</pallas_src>

<mosaic_0001>
module attributes {stable_mosaic.version = 11 : i64} {
  func.func @_sum_agg_kernel(%arg0: i32, %arg1: memref<24x128xbf16, #tpu.memory_space<vmem>>, %arg2: memref<48x24xbf16, #tpu.memory_space<vmem>>, %arg3: memref<64x48xbf16, #tpu.memory_space<vmem>>, %arg4: memref<32x128xf32, #tpu.memory_space<vmem>>) attributes {dimension_semantics = [#tpu.dimension_semantics<parallel>], iteration_bounds = array<i64: 2>, scalar_prefetch = 0 : i64, scratch_operands = 0 : i64, tpu.core_type = #tpu.core_type<tc>, window_params = [{transform_indices = @transform_0, window_bounds = array<i64: 24, 128>}, {pipeline_mode = #tpu.pipeline_mode<synchronous>, transform_indices = @transform_1, window_bounds = array<i64: 48, 24>}, {pipeline_mode = #tpu.pipeline_mode<synchronous>, transform_indices = @transform_2, window_bounds = array<i64: 64, 48>}, {transform_indices = @transform_3, window_bounds = array<i64: 32, 128>}]} {
    %c0 = arith.constant 0 : index
    %c0_0 = arith.constant 0 : index
    %0 = vector.load %arg2[%c0, %c0_0] : memref<48x24xbf16, #tpu.memory_space<vmem>>, vector<48x24xbf16>
    %c0_1 = arith.constant 0 : index
    %c0_2 = arith.constant 0 : index
    %1 = vector.load %arg1[%c0_1, %c0_2] : memref<24x128xbf16, #tpu.memory_space<vmem>>, vector<24x128xbf16>
    %cst = arith.constant dense<0.000000e+00> : vector<48x128xf32>
    %2 = tpu.matmul %0, %1, %cst {dimension_numbers = #tpu.dot_dimension_numbers<[1], [0], [0], [1], [0, 0, 1, 1], [], []>} : vector<48x24xbf16>, vector<24x128xbf16>, vector<48x128xf32> -> vector<48x128xf32>
    %cst_3 = arith.constant 0.000000e+00 : f32
    %3 = vector.broadcast %cst_3 : f32 to vector<48x128xf32>
    %4 = arith.maximumf %2, %3 : vector<48x128xf32>
    %5 = arith.truncf %4 : vector<48x128xf32> to vector<48x128xbf16>
    %c0_4 = arith.constant 0 : index
    %c0_5 = arith.constant 0 : index
    %6 = vector.load %arg3[%c0_4, %c0_5] : memref<64x48xbf16, #tpu.memory_space<vmem>>, vector<64x48xbf16>
    %cst_6 = arith.constant dense<0.000000e+00> : vector<64x128xf32>
    %7 = tpu.matmul %6, %5, %cst_6 {dimension_numbers = #tpu.dot_dimension_numbers<[1], [0], [0], [1], [0, 0, 1, 1], [], []>} : vector<64x48xbf16>, vector<48x128xbf16>, vector<64x128xf32> -> vector<64x128xf32>
    %cst_7 = arith.constant 0.000000e+00 : f32
    %8 = vector.broadcast %cst_7 : f32 to vector<64x128xf32>
    %9 = arith.maximumf %7, %8 : vector<64x128xf32>
    %10 = vector.extract_strided_slice %9 {offsets = [0, 0], sizes = [32, 128], strides = [1, 1]} : vector<64x128xf32> to vector<32x128xf32>
    %11 = vector.extract_strided_slice %9 {offsets = [32, 0], sizes = [32, 128], strides = [1, 1]} : vector<64x128xf32> to vector<32x128xf32>
    %12 = arith.addf %10, %11 : vector<32x128xf32>
    %c0_8 = arith.constant 0 : index
    %c0_9 = arith.constant 0 : index
    %13 = vector.load %arg4[%c0_8, %c0_9] : memref<32x128xf32, #tpu.memory_space<vmem>>, vector<32x128xf32>
    tpu.vector_store %arg4[%c0_8, %c0_9], %12 {strides = array<i32>} : memref<32x128xf32, #tpu.memory_space<vmem>>, vector<32x128xf32>,
    return
  }
  func.func @transform_0(%arg0: i32) -> (i32, i32) {
    %c0_i32 = arith.constant 0 : i32
    %c0_i32_0 = arith.constant 0 : i32
    return %c0_i32, %arg0 : i32, i32
  }
  func.func @transform_1(%arg0: i32) -> (i32, i32) {
    %c0_i32 = arith.constant 0 : i32
    %c0_i32_0 = arith.constant 0 : i32
    %c0_i32_1 = arith.constant 0 : i32
    return %c0_i32, %c0_i32_0 : i32, i32
  }
  func.func @transform_2(%arg0: i32) -> (i32, i32) {
    %c0_i32 = arith.constant 0 : i32
    %c0_i32_0 = arith.constant 0 : i32
    %c0_i32_1 = arith.constant 0 : i32
    return %c0_i32, %c0_i32_0 : i32, i32
  }
  func.func @transform_3(%arg0: i32) -> (i32, i32) {
    %c0_i32 = arith.constant 0 : i32
    %c0_i32_0 = arith.constant 0 : i32
    return %c0_i32, %arg0 : i32, i32
  }
}

</mosaic_0001>

<bundles_post_ra>
// kernel: tpu_custom_call.1
= control target key start
LH: loop header
LB: loop body
LE: loop exit
PB: predicated region body
PF: predicated region fallthrough
CT: control target
= control target key end

     0   :  { %8 = vsyncpa [#allocation4], 0  ;;  %s785_s0 = inlined_call_operand.vmem [shape: bf16[24,256], index: 0, kind: input, shape index: {}]   ;;  %s786_s1 = inlined_call_operand.vmem [shape: bf16[48,24], index: 1, kind: input, shape index: {}]   ;;  %s787_s2 = inlined_call_operand.vmem [shape: bf16[64,48], index: 2, kind: input, shape index: {}]   ;;  %s788_s3 = inlined_call_operand.hbm [shape: f32[32,256], index: 3, kind: output, shape index: {}]  }
   0x1   :  { %10 = vsyncpa [#allocation4 + $0x1], 0  ;;  %s666_s12 = smov 0   ;;  %s668_s13 = smov 0  }
   0x2   :  { %s670_s14 = smov 0   ;;  %s672_s15 = smov 0  }
   0x3 LB: > { %s469_s16 = sadd.s32 4294967295, %s641_s15   ;;  %s470_s17 = sadd.s32 4294967294, %s641_s15   ;;  %s641_s15 = sphi %s672_s15, %s794_s15   ;;  %s637_s14 = sphi %s670_s14, %s793_s14   ;;  %s633_s13 = sphi %s668_s13, %s792_s13   ;;  %s629_s12 = sphi %s666_s12, %s791_s12  }
   0x4   : > { %s689_s18 = sadd.s32 1, %s641_s15   ;;  %s23_s19 = sadd.s32 1, %s637_s14 }
   0x5   : > { %s20_s20 = ssub.s32 %s641_s15, %s689_s18  ;;  %p30_p0 = scmp.ne.s32.totalorder %s637_s14, %s633_s13 }
   0x6   : > { %p21_p1 = scmp.eq.s32.totalorder %s20_s20, 0  ;;  %p31_p2 = scmp.eq.s32.totalorder %s641_s15, 0 }
   0x7   : > { %p102_p3 = scmp.eq.s32.totalorder %s469_s16, 1  ;;  %p107_p4 = scmp.ne.s32.totalorder %s633_s13, %s629_s12 }
   0x8   : > { %s702_s21 = scalar_select %p21_p1, %s637_s14, %s23_s19  }
   0x9   : > { %p32_p5 = por %p31_p2, %p30_p0  ;;  %p704_p6 = por %p102_p3, %p30_p0 }
   0xa   : > { %p108_p7 = scmp.eq.s32.totalorder %s470_s17, 1  ;;  %p472_p9 = scmp.ge.s32.totalorder %s641_s15, 2 }
   0xc   : > { %p708_p8 = por %p108_p7, %p107_p4  ;;  %130 = sbr.rel (%p472_p9) target bundleno = 25 (0x19), region = 24 }
  0x11   : > { %133 = sbr.rel (!%p32_p5) target bundleno = 25 (0x19), region = 28  ;;  %s135_s24 = sand.u32 (%p32_p5), 1, %s637_s14  }
  0x12   : > { %s473_s25 = sshll.u32 (%p32_p5), %s641_s15, 2  ;;  %s535_s26 = smul.u32 (%p32_p5), 12, %s135_s24 }
  0x13   : > { %s139_s29 = scalar_lea.vmem (%p32_p5), %s785_s0, %s473_s25 }
  0x14   : > { %v156_v0 = vld [vmem:[%s139_s29] sm:$0xf] (%p32_p5)  ;;  %v158_v1 = vld [vmem:[%s139_s29 + $0x8] sm:$0xf] (%p32_p5)  ;;  %v160_v2 = vld [vmem:[%s139_s29 + $0x10] sm:$0xf] (%p32_p5) }
  0x15   : > { %s137_s30 = scalar_lea.vmem (%p32_p5), [#allocation2], %s535_s26 }
  0x16   : > { %157 = vst [vmem:[%s137_s30] sm:$0xf] %v156_v0 }
  0x17   : > { %159 = vst [vmem:[%s137_s30 + $0x4] sm:$0xf] %v158_v1 }
  0x18   : > { %161 = vst [vmem:[%s137_s30 + $0x8] sm:$0xf] %v160_v2 }
  0x19 PF: > { %p474_p10 = scmp.ge.s32.totalorder %s641_s15, 1  ;;  %p190_p11 = scmp.lt.s32.totalorder %s641_s15, 3 }
  0x1b   : > { %p191_p12 = pnand %p474_p10, %p190_p11 }
  0x1c   : > { %s723_s4 = sand.u32 (!%p191_p12), 1, %s633_s13   ;;  %s599_s25 = scalar_lea.hbm (!%p191_p12), %s788_s3, 64 }
  0x1d   : > { %194 = sbr.rel (%p191_p12) target bundleno = 384 (0x180), region = 69  ;;  %s475_s30 = sshll.u32 (!%p191_p12), %s723_s4, 5 }
  0x1e   : > { %s536_s5 = smul.u32 (!%p191_p12), 12, %s723_s4 }
  0x20   : > { %s199_s6 = scalar_lea.vmem (!%p191_p12), [#allocation2], %s536_s5  ;;  %s219_s5 = scalar_lea.vmem (!%p191_p12), [#allocation3], %s475_s30 }
  0x21   : > { %s399_s10 = sshll.u32 (!%p191_p12), %s219_s5, 4  ;;  %s400_s10 = int_to_ptr.vmem [resolvable:$true] %s399_s10 }
  0x22   : > { %v229_v3 = vld [vmem:[%s199_s6 + $0x8] sm:$0xf]  ;;  %vm264_vm0 = vcmask 1043456   ;;  %v522_v7 = vld [vmem:[%s199_s6] sm:$0xff]  ;;  %vm254_vm1 = vcmask 195584   ;;  %vm329_vm2 = vcmask 392192  }
  0x23   : > { %v250_v4 = vunpack.c.l.b16 %v229_v3  ;;  %v520_v8 = vld [vmem:[%s786_s1 + $0x8] sm:$0xff]  ;;  %v519_v9 = vld [vmem:[%s786_s1] sm:$0xff]  ;;  %v521_v10 = vld [vmem:[%s786_s1 + $0x10] sm:$0xff]  ;;  %s516_s6 = sshll.u32 %s469_s16, 3  ;;  %s388_s16 = scalar_lea.sflag [#allocation4], %s723_s4 }
  0x24   : > { %v523_v26 = vld [vmem:[%s787_s2] sm:$0xff]  ;;  %v524_v27 = vld [vmem:[%s787_s2 + $0x8] sm:$0xff]  ;;  %v525_v28 = vld [vmem:[%s787_s2 + $0x10] sm:$0xff]  ;;  %s398_s9 = scalar_lea.hbm %s788_s3, %s516_s6 }
  0x25   : > { %v252_v5 = vpack.c.b16 %v250_v4, %v250_v4  ;;  %v526_v29 = vld [vmem:[%s787_s2 + $0x18] sm:$0xff]  ;;  %s753_s11 = sshll.u32 %s398_s9, 4  ;;  %s402_s11 = int_to_ptr.hbm [resolvable:$true] %s753_s11 }
  0x26   : > { %s593_s17 = sshra.s32 %s402_s11, 4  ;;  %s594_s17 = int_to_ptr.hbm [resolvable:$true] %s593_s17 }
  0x27   : > { %v266_v6 = vsel %vm264_vm0, %v252_v5, 0  ;;  %s595_s19 = scalar_lea.hbm %s594_s17, 32  ;;  %p600_p2 = scmp.lt.s32.totalorder %s594_s17, %s788_s3 }
  0x28   : > { %527 = vmatpush.bf16.msra.mxu3 %v266_v6  ;;  %274 = vmatpush.bf16.msra.mxu0 %v266_v6  ;;  %p596_p13 = scmp.ne.s32.totalorder %s594_s17, %s595_s19  ;;  %p601_p3 = scmp.lt.s32.totalorder %s599_s25, %s595_s19 }
  0x2a   : > { %p597_p0 = pnand %p596_p13, %p704_p6  ;;  %p602_p4 = por %p601_p3, %p600_p2 }
  0x2c   : > { %528 = vmatpush.bf16.msra.mxu3 %v522_v7  ;;  %275 = vmatpush.bf16.msra.mxu0 %v522_v7  ;;  %p598_p1 = pneg %p597_p0 }
  0x2e   : > { %p603_p5 = pnand %p602_p4, %p598_p1 }
  0x2f   : > { %493 = vmatmul.msk.bf16.vlgmr.msra.gmra.mxu3 %vm254_vm1, %v520_v8  ;;  %492 = vmatmul.msk.bf16.vlgmr.msra.gmra.mxu0 %vm254_vm1, %v519_v9 }
  0x3f   : > { %494 = vmatmul.msk.bf16.gmra.mxu3 %vm254_vm1, %v521_v10 }
  0xac   : > { %v277_v14 = vpop.f32.mrf.mxu0 }
  0xad   : > { %v292_v23 = vmax.f32 %v277_v14, 0.0 }
  0xb2   : > { %v282_v11 = vpop.f32.mrf.mxu3 }
  0xb3   : > { %v294_v21 = vmax.f32 %v282_v11, 0.0 }
  0xb4   : > { %v279_v20 = vpop.f32.mrf.mxu0 }
  0xb5   : > { %v293_v24 = vmax.f32 %v279_v20, 0.0 }
  0xb7   : > { %v298_v25 = vpack.c.bf16 %v293_v24, %v292_v23 }
  0xba   : > { %v284_v12 = vpop.f32.mrf.mxu3 }
  0xbb   : > { %v295_v18 = vmax.f32 %v284_v12, 0.0 }
  0xbd   : > { %v299_v22 = vpack.c.bf16 %v295_v18, %v294_v21 }
  0xc2   : > { %v287_v13 = vpop.f32.mrf.mxu3 }
  0xc3   : > { %v296_v16 = vmax.f32 %v287_v13, 0.0 }
  0xca   : > { %v289_v15 = vpop.f32.mrf.mxu3 }
  0xcb   : > { %v297_v17 = vmax.f32 %v289_v15, 0.0 }
  0xcd   : > { %v300_v19 = vpack.c.bf16 %v297_v17, %v296_v16 }
  0xcf   : > { %347 = vmatpush.bf16.msrb.mxu0 %v300_v19  ;;  %529 = vmatpush.bf16.msra.mxu1 %v300_v19 }
  0xd0   : > { %530 = vmatpush.bf16.msra.mxu2 %v300_v19 }
  0xd3   : > { %348 = vmatpush.bf16.msrb.mxu0 %v299_v22  ;;  %531 = vmatpush.bf16.msra.mxu1 %v299_v22 }
  0xd4   : > { %532 = vmatpush.bf16.msra.mxu2 %v299_v22 }
  0xd7   : > { %349 = vmatpush.bf16.msrb.mxu0 %v298_v25  ;;  %533 = vmatpush.bf16.msra.mxu1 %v298_v25 }
  0xd8   : > { %534 = vmatpush.bf16.msra.mxu2 %v298_v25 }
  0xda   : > { %511 = vmatmul.msk.bf16.vlgmr.msrb.gmra.mxu0 %vm329_vm2, %v523_v26  ;;  %512 = vmatmul.msk.bf16.vlgmr.msra.gmra.mxu1 %vm329_vm2, %v524_v27 }
  0xdb   : > { %513 = vmatmul.msk.bf16.vlgmr.msra.gmra.mxu2 %vm329_vm2, %v525_v28 }
  0xeb   : > { %514 = vmatmul.msk.bf16.gmra.mxu2 %vm329_vm2, %v526_v29 }
 0x157   : > { %v351_v30 = vpop.f32.mrf.mxu0  ;;  %v356_v40 = vpop.f32.mrf.mxu1 }
 0x158   : > { %v371_v31 = vmax.f32 %v351_v30, 0.0  ;;  %v373_v41 = vmax.f32 %v356_v40, 0.0 }
 0x15e   : > { %v361_v32 = vpop.f32.mrf.mxu2 }
 0x15f   : > { %v375_v33 = vmax.f32 %v361_v32, 0.0  ;;  %v353_v35 = vpop.f32.mrf.mxu0  ;;  %v358_v45 = vpop.f32.mrf.mxu1 }
 0x160   : > { %v372_v36 = vmax.f32 %v353_v35, 0.0  ;;  %v374_v47 = vmax.f32 %v358_v45, 0.0 }
 0x161   : > { %v379_v34 = vadd.f32 %v375_v33, %v371_v31 }
 0x163   : > { %383 = vst [vmem:[%s219_s5] sm:$0xff] %v379_v34 }
 0x166   : > { %v363_v37 = vpop.f32.mrf.mxu2 }
 0x167   : > { %v376_v38 = vmax.f32 %v363_v37, 0.0 }
 0x169   : > { %v380_v39 = vadd.f32 %v376_v38, %v372_v36 }
 0x16b   : > { %384 = vst [vmem:[%s219_s5 + $0x8] sm:$0xff] %v380_v39 }
 0x16e   : > { %v366_v42 = vpop.f32.mrf.mxu2 }
 0x16f   : > { %v377_v43 = vmax.f32 %v366_v42, 0.0 }
 0x171   : > { %v381_v44 = vadd.f32 %v377_v43, %v373_v41 }
 0x173   : > { %385 = vst [vmem:[%s219_s5 + $0x10] sm:$0xff] %v381_v44 }
 0x176   : > { %v368_v46 = vpop.f32.mrf.mxu2 }
 0x177   : > { %v378_v48 = vmax.f32 %v368_v46, 0.0 }
 0x179   : > { %v382_v49 = vadd.f32 %v378_v48, %v374_v47 }
 0x17b   : > { %386 = vst [vmem:[%s219_s5 + $0x18] sm:$0xff] %v382_v49 }
 0x17c   : > { %606 = shalt.err (!%p603_p5)
}
 0x17d   : > { %s643_s4 = smov 128   ;;  %s644_s28 = smov 256  }
 0x17e   : > { %s645_s29 = smov 8  }
 0x17f   : > { %537 = dma.vmem_to_hbm [thread:$0]  (%p704_p6), %s400_s10, 512, %s402_s11, %s388_s16, %s643_s4, %s644_s28, %s645_s29  }
 0x180 PF: > { %s416_s30 = sand.u32 1, %s629_s12   ;;  %p540_p7 = pnand %p472_p9, %p708_p8 }
 0x181   : > { %s417_s5 = scalar_lea.sflag [#allocation4], %s416_s30 }
 0x182   : > { %p541_p10 = pneg %p540_p7 }
 0x184   : > { %624 = dma.done.wait (%p541_p10), %s417_s5, 512  }
 0x185   : > { %626 = vsyncadd (%p541_p10), %s417_s5, 4294966784  ;;  %p13_p11 = scmp.ge.s32.totalorder %s689_s18, 4   ;;  %s791_s12 = smov %s633_s13 }
 0x186   : > { %s792_s13 = smov %s637_s14  ;;  %s793_s14 = smov %s702_s21 }
 0x187   : > { %s794_s15 = smov %s689_s18  ;;  %15 = sbr.rel (!%p13_p11) target bundleno = 3 (0x3), region = 113 }
 0x18c   :  { %423 = vsyncpa [#allocation4], 1 }
 0x18d   :  { %425 = vsyncpa [#allocation4 + $0x1], 1 }

</bundles_post_ra>
